<compile_context>
chip_gen: v6e
topology: v6e:2x2x1
jax: 0.10.0
libtpu: 0.0.40
codegen_flags: <defaults>
</compile_context>

<pallas_src>
import jax
import jax.numpy as jnp
import numpy as np
from jax.experimental import pallas as pl
from jax.experimental.pallas import tpu as pltpu


def _weff_kernel(x_ref, wq_ref, wk_ref, wv_ref, temp_ref, bias_ref,
                 weff_ref, g_acc):
    """Pass 1: gram accumulation + (C,C) attention finalize.

    x_ref    : (1, C, tn)  bf16  spatial tile of x (zero-padded tail)
    wq_ref   : (C, C)      f32   q projection rows (all heads, head-major)
    wk_ref   : (C, C)      f32   k projection rows
    wv_ref   : (C, C)      f32   v_CA projection rows
    temp_ref : (C, 1)      f32   per-row temperature (head-repeated)
    bias_ref : (C, C)      f32   block-diagonal head mask (0 / -1e30)
    weff_ref : (1, C, C)   bf16  output: effective channel-mixing matrix
    g_acc    : (C, C)      f32   scratch accumulator for x @ x^T
    """
    t = pl.program_id(1)

    @pl.when(t == 0)
    def _():
        g_acc[...] = jnp.zeros_like(g_acc)

    xt = x_ref[0]                                            # (C, tn) bf16
    g_acc[...] += jax.lax.dot_general(
        xt, xt, (((1,), (1,)), ((), ())),
        preferred_element_type=jnp.float32)                  # += x @ x^T

    @pl.when(t == pl.num_programs(1) - 1)
    def _():
        g = g_acc[...]                                       # (C, C) f32
        wq = wq_ref[...]
        wk = wk_ref[...]

        a = jnp.dot(wq, g, preferred_element_type=jnp.float32)    # Wq G
        bk = jnp.dot(wk, g, preferred_element_type=jnp.float32)   # Wk G
        q_ss = jnp.sum(a * wq, axis=-1, keepdims=True)            # diag(Wq G Wq^T)
        k_ss = jnp.sum(bk * wk, axis=-1, keepdims=True)           # diag(Wk G Wk^T)

        # F.normalize eps = 1e-12  ->  rsqrt(max(ss, eps^2)).
        eps2 = 1e-24
        row_scale = temp_ref[...] * jax.lax.rsqrt(jnp.maximum(q_ss, eps2))
        col_scale = jax.lax.rsqrt(jnp.maximum(k_ss, eps2))

        # Fold row/column normalization into the matmul operands (avoids a
        # (C,1)->(1,C) transpose): attn = (row_scale*A) @ (col_scale*Wk)^T.
        attn = jax.lax.dot_general(
            a * row_scale, wk * col_scale,
            (((1,), (1,)), ((), ())),
            preferred_element_type=jnp.float32)              # (C, C)
        attn = attn + bias_ref[...]                          # head mask (f32 only!)

        attn = attn - jnp.max(attn, axis=-1, keepdims=True)
        e = jnp.exp(attn)
        p = e / jnp.sum(e, axis=-1, keepdims=True)           # block-diag softmax

        weff = jnp.dot(p, wv_ref[...], preferred_element_type=jnp.float32)
        weff_ref[0] = weff.astype(weff_ref.dtype)


def _apply_kernel(weff_ref, x_ref, o_ref):
    """Pass 2: out_tile = Weff @ x_tile  (bf16 operands, f32 acc)."""
    o_ref[0] = jnp.dot(weff_ref[0], x_ref[0],
                       preferred_element_type=jnp.float32).astype(o_ref.dtype)


def channel_attention(x, qkvv_weight, temperature, num_heads, *,
                      tile_n=512, out_dtype=jnp.bfloat16):
    """x: (B, C, W, H, Z) f32.  qkvv_weight: (4C, C) torch Linear weight
    (no bias).  temperature: (num_heads, 1, 1).  Returns (B, C, W, H, Z)."""
    B, C, W, H, Z = x.shape
    N = W * H * Z
    assert C % num_heads == 0, "C must be divisible by num_heads"
    d = C // num_heads

    # Lane-dense spatial tile (multiple of 128), no larger than needed.
    n128 = ((N + 127) // 128) * 128
    tn = min(tile_n, n128)
    Npad = ((N + tn - 1) // tn) * tn
    nt = Npad // tn

    # Cast to bf16 BEFORE padding (halves pad bytes).  Zero columns leave
    # the gram, the L2 norms and the real output columns unchanged.
    x2 = x.reshape(B, C, N).astype(jnp.bfloat16)
    if Npad != N:
        x2 = jnp.pad(x2, ((0, 0), (0, 0), (0, Npad - N)))

    # torch Linear rows are ordered [4, heads, d] over out-features, so the
    # first 3C rows are [q_all_heads; k_all_heads; v_CA_all_heads] head-major.
    # v_SA (last C rows) is never staged.  Weights stay f32 (tiny, keeps the
    # (C,C) finalize path precise).
    wq = qkvv_weight[0:C].astype(jnp.float32)
    wk = qkvv_weight[C:2 * C].astype(jnp.float32)
    wv = qkvv_weight[2 * C:3 * C].astype(jnp.float32)

    temp_rows = jnp.repeat(
        temperature.reshape(num_heads).astype(jnp.float32), d).reshape(C, 1)

    # Precomputed additive block-diagonal head mask (resident input).
    head = np.arange(C) // d
    bias = np.where(head[:, None] == head[None, :], 0.0, -1e30).astype(np.float32)
    bias = jnp.asarray(bias)

    bf16, f32 = 2, 4
    # Honest per-step VMEM estimate, 2x headroom, capped at 48 MiB (v7x-safe).
    est1 = (2 * C * tn * bf16            # x tile, double-buffered
            + 2 * 3 * C * C * f32        # Wq/Wk/Wv (resident)
            + 2 * C * C * f32            # mask bias
            + 2 * C * f32                # temperature
            + 2 * C * C * bf16           # Weff output block
            + C * C * f32                # G scratch
            + 8 * C * C * f32)           # finalize temporaries
    vmem1 = int(min(48 << 20, max(16 << 20, 2 * est1)))

    weff = pl.pallas_call(
        _weff_kernel,
        out_shape=jax.ShapeDtypeStruct((B, C, C), jnp.bfloat16),
        grid_spec=pltpu.PrefetchScalarGridSpec(
            num_scalar_prefetch=0,
            grid=(B, nt),
            in_specs=[
                pl.BlockSpec((1, C, tn), lambda b, t: (b, 0, t)),
                pl.BlockSpec((C, C), lambda b, t: (0, 0)),
                pl.BlockSpec((C, C), lambda b, t: (0, 0)),
                pl.BlockSpec((C, C), lambda b, t: (0, 0)),
                pl.BlockSpec((C, 1), lambda b, t: (0, 0)),
                pl.BlockSpec((C, C), lambda b, t: (0, 0)),
            ],
            out_specs=pl.BlockSpec((1, C, C), lambda b, t: (b, 0, 0)),
            scratch_shapes=[pltpu.VMEM((C, C), jnp.float32)],
        ),
        compiler_params=pltpu.CompilerParams(
            dimension_semantics=("parallel", "arbitrary"),
            vmem_limit_bytes=vmem1),
    )(x2, wq, wk, wv, temp_rows, bias)

    est2 = 2 * C * C * bf16 + 2 * C * tn * bf16 + 2 * C * tn * bf16
    vmem2 = int(min(48 << 20, max(16 << 20, 2 * est2)))

    out = pl.pallas_call(
        _apply_kernel,
        out_shape=jax.ShapeDtypeStruct((B, C, Npad), out_dtype),
        grid_spec=pltpu.PrefetchScalarGridSpec(
            num_scalar_prefetch=0,
            grid=(B, nt),
            in_specs=[
                pl.BlockSpec((1, C, C), lambda b, t: (b, 0, 0)),
                pl.BlockSpec((1, C, tn), lambda b, t: (b, 0, t)),
            ],
            out_specs=pl.BlockSpec((1, C, tn), lambda b, t: (b, 0, t)),
        ),
        compiler_params=pltpu.CompilerParams(
            dimension_semantics=("parallel", "parallel"),
            vmem_limit_bytes=vmem2),
    )(weff, x2)

    return out[:, :, :N].reshape(B, C, W, H, Z)


def channel_attention_reference(x, qkvv_weight, temperature, num_heads):
    """Pure-JAX f32 reference mirroring the torch forward exactly."""
    B, C, W, H, Z = x.shape
    N = W * H * Z
    d = C // num_heads
    xt = x.reshape(B, C, N).transpose(0, 2, 1)                    # (B, N, C)
    qkvv = xt @ qkvv_weight.T                                     # (B, N, 4C)
    qkvv = qkvv.reshape(B, N, 4, num_heads, d).transpose(2, 0, 3, 1, 4)
    q, k, v = qkvv[0], qkvv[1], qkvv[2]                           # (B, H, N, d)
    q = jnp.swapaxes(q, -2, -1)                                   # (B, H, d, N)
    k = jnp.swapaxes(k, -2, -1)
    v = jnp.swapaxes(v, -2, -1)
    qn = q / jnp.maximum(jnp.linalg.norm(q, axis=-1, keepdims=True), 1e-12)
    kn = k / jnp.maximum(jnp.linalg.norm(k, axis=-1, keepdims=True), 1e-12)
    attn = (qn @ jnp.swapaxes(kn, -2, -1)) * temperature[None]    # (B, H, d, d)
    attn = jax.nn.softmax(attn, axis=-1)
    x_ca = (attn @ v).transpose(0, 3, 1, 2).reshape(B, N, C)
    return x_ca.reshape(B, W, H, Z, C).transpose(0, 4, 1, 2, 3)


if __name__ == "__main__":
    # Small shapes consistent with the module: hidden_size == C.
    B, C, W, H, Z = 2, 16, 4, 4, 4
    num_heads = 2

    key = jax.random.PRNGKey(0)
    kx, kw = jax.random.split(key)
    x = jax.random.normal(kx, (B, C, W, H, Z), dtype=jnp.float32)
    qkvv_weight = jax.random.normal(kw, (4 * C, C), dtype=jnp.float32) * 0.1
    temperature = jnp.ones((num_heads, 1, 1), dtype=jnp.float32)  # torch.ones init

    out = channel_attention(x, qkvv_weight, temperature, num_heads)
    out = jax.block_until_ready(out)

    ref = channel_attention_reference(x, qkvv_weight, temperature, num_heads)
    # bf16 gram / MXU operands and a bf16 output stream -> loose-ish tolerance
    # vs. the pure-f32 reference.
    np.testing.assert_allclose(np.asarray(out).astype(np.float32),
                               np.asarray(ref), rtol=3e-2, atol=3e-2)
    print("KERNEL_OK")
</pallas_src>

<mosaic_0001>
module attributes {stable_mosaic.version = 11 : i64} {
  func.func @_weff_kernel(%arg0: i32, %arg1: i32, %arg2: memref<1x16x128xbf16, #tpu.memory_space<vmem>>, %arg3: memref<16x16xf32, #tpu.memory_space<vmem>>, %arg4: memref<16x16xf32, #tpu.memory_space<vmem>>, %arg5: memref<16x16xf32, #tpu.memory_space<vmem>>, %arg6: memref<16x1xf32, #tpu.memory_space<vmem>>, %arg7: memref<16x16xf32, #tpu.memory_space<vmem>>, %arg8: memref<1x16x16xbf16, #tpu.memory_space<vmem>>, %arg9: memref<16x16xf32, #tpu.memory_space<vmem>>) attributes {dimension_semantics = [#tpu.dimension_semantics<parallel>, #tpu.dimension_semantics<arbitrary>], iteration_bounds = array<i64: 2, 1>, scalar_prefetch = 0 : i64, scratch_operands = 1 : i64, tpu.core_type = #tpu.core_type<tc>, window_params = [{transform_indices = @transform_0, window_bounds = array<i64: 1, 16, 128>}, {pipeline_mode = #tpu.pipeline_mode<synchronous>, transform_indices = @transform_1, window_bounds = array<i64: 16, 16>}, {pipeline_mode = #tpu.pipeline_mode<synchronous>, transform_indices = @transform_2, window_bounds = array<i64: 16, 16>}, {pipeline_mode = #tpu.pipeline_mode<synchronous>, transform_indices = @transform_3, window_bounds = array<i64: 16, 16>}, {pipeline_mode = #tpu.pipeline_mode<synchronous>, transform_indices = @transform_4, window_bounds = array<i64: 16, 1>}, {pipeline_mode = #tpu.pipeline_mode<synchronous>, transform_indices = @transform_5, window_bounds = array<i64: 16, 16>}, {transform_indices = @transform_6, window_bounds = array<i64: 1, 16, 16>}]} {
    %c0_i32 = arith.constant 0 : i32
    %0 = arith.cmpi eq, %arg1, %c0_i32 : i32
    %1 = arith.extui %0 : i1 to i32
    %c0_i32_0 = arith.constant 0 : i32
    %2 = arith.cmpi ne, %1, %c0_i32_0 : i32
    scf.if %2 {
      %cst_9 = arith.constant 0.000000e+00 : f32
      %12 = vector.broadcast %cst_9 : f32 to vector<16x16xf32>
      %c0_10 = arith.constant 0 : index
      %c0_11 = arith.constant 0 : index
      %13 = vector.load %arg9[%c0_10, %c0_11] : memref<16x16xf32, #tpu.memory_space<vmem>>, vector<16x16xf32>
      tpu.vector_store %arg9[%c0_10, %c0_11], %12 {strides = array<i32>} : memref<16x16xf32, #tpu.memory_space<vmem>>, vector<16x16xf32>,
    } else {
    }
    %c0 = arith.constant 0 : index
    %c0_1 = arith.constant 0 : index
    %c0_2 = arith.constant 0 : index
    %3 = vector.load %arg2[%c0, %c0_1, %c0_2] : memref<1x16x128xbf16, #tpu.memory_space<vmem>>, vector<1x16x128xbf16>
    %4 = vector.shape_cast %3 : vector<1x16x128xbf16> to vector<16x128xbf16>
    %c0_3 = arith.constant 0 : index
    %c0_4 = arith.constant 0 : index
    %5 = vector.load %arg9[%c0_3, %c0_4] : memref<16x16xf32, #tpu.memory_space<vmem>>, vector<16x16xf32>
    %cst = arith.constant dense<0.000000e+00> : vector<16x16xf32>
    %6 = tpu.matmul %4, %4, %cst {dimension_numbers = #tpu.dot_dimension_numbers<[1], [1], [0], [0], [0, 0, 1, 0], [], []>} : vector<16x128xbf16>, vector<16x128xbf16>, vector<16x16xf32> -> vector<16x16xf32>
    %7 = arith.addf %5, %6 : vector<16x16xf32>
    %c0_5 = arith.constant 0 : index
    %c0_6 = arith.constant 0 : index
    %8 = vector.load %arg9[%c0_5, %c0_6] : memref<16x16xf32, #tpu.memory_space<vmem>>, vector<16x16xf32>
    tpu.vector_store %arg9[%c0_5, %c0_6], %7 {strides = array<i32>} : memref<16x16xf32, #tpu.memory_space<vmem>>, vector<16x16xf32>,
    %c0_i32_7 = arith.constant 0 : i32
    %9 = arith.cmpi eq, %arg1, %c0_i32_7 : i32
    %10 = arith.extui %9 : i1 to i32
    %c0_i32_8 = arith.constant 0 : i32
    %11 = arith.cmpi ne, %10, %c0_i32_8 : i32
    scf.if %11 {
      %c0_9 = arith.constant 0 : index
      %c0_10 = arith.constant 0 : index
      %12 = vector.load %arg9[%c0_9, %c0_10] : memref<16x16xf32, #tpu.memory_space<vmem>>, vector<16x16xf32>
      %c0_11 = arith.constant 0 : index
      %c0_12 = arith.constant 0 : index
      %13 = vector.load %arg3[%c0_11, %c0_12] : memref<16x16xf32, #tpu.memory_space<vmem>>, vector<16x16xf32>
      %c0_13 = arith.constant 0 : index
      %c0_14 = arith.constant 0 : index
      %14 = vector.load %arg4[%c0_13, %c0_14] : memref<16x16xf32, #tpu.memory_space<vmem>>, vector<16x16xf32>
      %cst_15 = arith.constant dense<0.000000e+00> : vector<16x16xf32>
      %15 = tpu.matmul %13, %12, %cst_15 {dimension_numbers = #tpu.dot_dimension_numbers<[1], [0], [0], [1], [0, 0, 1, 1], [], []>} : vector<16x16xf32>, vector<16x16xf32>, vector<16x16xf32> -> vector<16x16xf32>
      %cst_16 = arith.constant dense<0.000000e+00> : vector<16x16xf32>
      %16 = tpu.matmul %14, %12, %cst_16 {dimension_numbers = #tpu.dot_dimension_numbers<[1], [0], [0], [1], [0, 0, 1, 1], [], []>} : vector<16x16xf32>, vector<16x16xf32>, vector<16x16xf32> -> vector<16x16xf32>
      %17 = arith.mulf %15, %13 : vector<16x16xf32>
      %cst_17 = arith.constant dense<0.000000e+00> : vector<16xf32>
      %18 = vector.multi_reduction <add>, %17, %cst_17 [1] : vector<16x16xf32> to vector<16xf32>
      %19 = vector.shape_cast %18 : vector<16xf32> to vector<16x1xf32>
      %20 = arith.mulf %16, %14 : vector<16x16xf32>
      %cst_18 = arith.constant dense<0.000000e+00> : vector<16xf32>
      %21 = vector.multi_reduction <add>, %20, %cst_18 [1] : vector<16x16xf32> to vector<16xf32>
      %22 = vector.shape_cast %21 : vector<16xf32> to vector<16x1xf32>
      %c0_19 = arith.constant 0 : index
      %c0_20 = arith.constant 0 : index
      %23 = vector.load %arg6[%c0_19, %c0_20] : memref<16x1xf32, #tpu.memory_space<vmem>>, vector<16x1xf32>
      %cst_21 = arith.constant 1.000000e-24 : f32
      %24 = vector.broadcast %cst_21 : f32 to vector<16x1xf32>
      %25 = arith.maximumf %19, %24 : vector<16x1xf32>
      %26 = math.rsqrt %25 : vector<16x1xf32>
      %27 = arith.mulf %23, %26 : vector<16x1xf32>
      %cst_22 = arith.constant 1.000000e-24 : f32
      %28 = vector.broadcast %cst_22 : f32 to vector<16x1xf32>
      %29 = arith.maximumf %22, %28 : vector<16x1xf32>
      %30 = math.rsqrt %29 : vector<16x1xf32>
      %31 = vector.broadcast %27 : vector<16x1xf32> to vector<16x16xf32>
      %32 = arith.mulf %15, %31 : vector<16x16xf32>
      %33 = vector.broadcast %30 : vector<16x1xf32> to vector<16x16xf32>
      %34 = arith.mulf %14, %33 : vector<16x16xf32>
      %cst_23 = arith.constant dense<0.000000e+00> : vector<16x16xf32>
      %35 = tpu.matmul %32, %34, %cst_23 {dimension_numbers = #tpu.dot_dimension_numbers<[1], [1], [0], [0], [0, 0, 1, 0], [], []>} : vector<16x16xf32>, vector<16x16xf32>, vector<16x16xf32> -> vector<16x16xf32>
      %c0_24 = arith.constant 0 : index
      %c0_25 = arith.constant 0 : index
      %36 = vector.load %arg7[%c0_24, %c0_25] : memref<16x16xf32, #tpu.memory_space<vmem>>, vector<16x16xf32>
      %37 = arith.addf %35, %36 : vector<16x16xf32>
      %cst_26 = arith.constant dense<0xFF800000> : vector<16xf32>
      %38 = vector.multi_reduction <maximumf>, %37, %cst_26 [1] : vector<16x16xf32> to vector<16xf32>
      %39 = vector.shape_cast %38 : vector<16xf32> to vector<16x1xf32>
      %40 = vector.broadcast %39 : vector<16x1xf32> to vector<16x16xf32>
      %41 = arith.subf %37, %40 : vector<16x16xf32>
      %42 = math.exp %41 : vector<16x16xf32>
      %cst_27 = arith.constant dense<0.000000e+00> : vector<16xf32>
      %43 = vector.multi_reduction <add>, %42, %cst_27 [1] : vector<16x16xf32> to vector<16xf32>
      %44 = vector.shape_cast %43 : vector<16xf32> to vector<16x1xf32>
      %45 = vector.broadcast %44 : vector<16x1xf32> to vector<16x16xf32>
      %46 = arith.divf %42, %45 : vector<16x16xf32>
      %c0_28 = arith.constant 0 : index
      %c0_29 = arith.constant 0 : index
      %47 = vector.load %arg5[%c0_28, %c0_29] : memref<16x16xf32, #tpu.memory_space<vmem>>, vector<16x16xf32>
      %cst_30 = arith.constant dense<0.000000e+00> : vector<16x16xf32>
      %48 = tpu.matmul %46, %47, %cst_30 {dimension_numbers = #tpu.dot_dimension_numbers<[1], [0], [0], [1], [0, 0, 1, 1], [], []>} : vector<16x16xf32>, vector<16x16xf32>, vector<16x16xf32> -> vector<16x16xf32>
      %49 = arith.truncf %48 : vector<16x16xf32> to vector<16x16xbf16>
      %c0_31 = arith.constant 0 : index
      %c0_32 = arith.constant 0 : index
      %c0_33 = arith.constant 0 : index
      %50 = vector.load %arg8[%c0_31, %c0_32, %c0_33] : memref<1x16x16xbf16, #tpu.memory_space<vmem>>, vector<1x16x16xbf16>
      %51 = vector.shape_cast %50 : vector<1x16x16xbf16> to vector<16x16xbf16>
      %52 = vector.shape_cast %49 : vector<16x16xbf16> to vector<1x16x16xbf16>
      tpu.vector_store %arg8[%c0_31, %c0_32, %c0_33], %52 {strides = array<i32>} : memref<1x16x16xbf16, #tpu.memory_space<vmem>>, vector<1x16x16xbf16>,
    } else {
    }
    return
  }
  func.func @transform_0(%arg0: i32, %arg1: i32) -> (i32, i32, i32) {
    %c0_i32 = arith.constant 0 : i32
    %c0_i32_0 = arith.constant 0 : i32
    return %arg0, %c0_i32, %arg1 : i32, i32, i32
  }
  func.func @transform_1(%arg0: i32, %arg1: i32) -> (i32, i32) {
    %c0_i32 = arith.constant 0 : i32
    %c0_i32_0 = arith.constant 0 : i32
    %c0_i32_1 = arith.constant 0 : i32
    return %c0_i32, %c0_i32_0 : i32, i32
  }
  func.func @transform_2(%arg0: i32, %arg1: i32) -> (i32, i32) {
    %c0_i32 = arith.constant 0 : i32
    %c0_i32_0 = arith.constant 0 : i32
    %c0_i32_1 = arith.constant 0 : i32
    return %c0_i32, %c0_i32_0 : i32, i32
  }
  func.func @transform_3(%arg0: i32, %arg1: i32) -> (i32, i32) {
    %c0_i32 = arith.constant 0 : i32
    %c0_i32_0 = arith.constant 0 : i32
    %c0_i32_1 = arith.constant 0 : i32
    return %c0_i32, %c0_i32_0 : i32, i32
  }
  func.func @transform_4(%arg0: i32, %arg1: i32) -> (i32, i32) {
    %c0_i32 = arith.constant 0 : i32
    %c0_i32_0 = arith.constant 0 : i32
    %c0_i32_1 = arith.constant 0 : i32
    return %c0_i32, %c0_i32_0 : i32, i32
  }
  func.func @transform_5(%arg0: i32, %arg1: i32) -> (i32, i32) {
    %c0_i32 = arith.constant 0 : i32
    %c0_i32_0 = arith.constant 0 : i32
    %c0_i32_1 = arith.constant 0 : i32
    return %c0_i32, %c0_i32_0 : i32, i32
  }
  func.func @transform_6(%arg0: i32, %arg1: i32) -> (i32, i32, i32) {
    %c0_i32 = arith.constant 0 : i32
    %c0_i32_0 = arith.constant 0 : i32
    %c0_i32_1 = arith.constant 0 : i32
    return %arg0, %c0_i32, %c0_i32_0 : i32, i32, i32
  }
}

</mosaic_0001>

<bundles_post_ra>
// kernel: tpu_custom_call.1
= control target key start
LH: loop header
LB: loop body
LE: loop exit
PB: predicated region body
PF: predicated region fallthrough
CT: control target
= control target key end

     0   :  { %11 = vsyncpa [#allocation4], 0  ;;  %s1618_s0 = inlined_call_operand.vmem [shape: bf16[2,16,128], index: 0, kind: input, shape index: {}]   ;;  %s1619_s1 = inlined_call_operand.hbm [shape: f32[16,16], index: 1, kind: input, shape index: {}]   ;;  %s1620_s2 = inlined_call_operand.hbm [shape: f32[16,16], index: 2, kind: input, shape index: {}]   ;;  %s1621_s3 = inlined_call_operand.hbm [shape: f32[16,16], index: 3, kind: input, shape index: {}]   ;;  %s1622_s4 = inlined_call_operand.vmem [shape: f32[16,1], index: 4, kind: input, shape index: {}]   ;;  %s1623_s5 = inlined_call_operand.hbm [shape: f32[16,16], index: 5, kind: input, shape index: {}]   ;;  %s1624_s6 = inlined_call_operand.hbm [shape: bf16[2,16,16], index: 6, kind: output, shape index: {}]  }
   0x1   :  { %12 = vsyncpa [#allocation7], 0 }
   0x2   :  { %13 = vsyncpa [#allocation10], 0 }
   0x3   :  { %14 = vsyncpa [#allocation5], 0 }
   0x4   :  { %16 = vsyncpa [#allocation5 + $0x1], 0  ;;  %s1398_s21 = smov 0   ;;  %s1400_s22 = smov 0  }
   0x5   :  { %s1402_s23 = smov 0   ;;  %s1404_s24 = smov 0  }
   0x6   :  { %s1406_s25 = smov 0   ;;  %s1408_s26 = smov 0  }
   0x7 LB: > { %s945_s27 = sadd.s32 4294967295, %s1349_s26   ;;  %s946_s28 = sadd.s32 4294967294, %s1349_s26   ;;  %s1349_s26 = sphi %s1408_s26, %s22_s26   ;;  %s1345_s25 = sphi %s1406_s25, %s1634_s25   ;;  %s1341_s24 = sphi %s1404_s24, %s1633_s24   ;;  %s1337_s23 = sphi %s1402_s23, %s1632_s23   ;;  %s1333_s22 = sphi %s1400_s22, %s1631_s22   ;;  %s1329_s21 = sphi %s1398_s21, %s1630_s21  }
   0x8   : > { %s34_s29 = sadd.s32 1, %s1345_s25  ;;  %s174_s30 = sadd.s32 1, %s1337_s23 }
   0x9   : > { %p36_p0 = scmp.ge.s32.totalorder %s34_s29, 2  ;;  %p184_p1 = scmp.ne.s32.totalorder %s1337_s23, %s1333_s22 }
   0xa   : > { %p185_p2 = scmp.eq.s32.totalorder %s945_s27, 1  ;;  %p190_p3 = scmp.ne.s32.totalorder %s1333_s22, %s1329_s21 }
   0xb   : > { %s1636_s29 = smov (%p36_p0, %s34_s29), 0  ;;  %p191_p5 = scmp.eq.s32.totalorder %s946_s28, 1 }
   0xc   : > { %p1438_p4 = por %p185_p2, %p184_p1  ;;  %s171_s8 = ssub.s32 %s1345_s25, %s1636_s29 }
   0xd   : > { %p947_p6 = scmp.ge.s32.totalorder %s1349_s26, 1  ;;  %p172_p7 = scmp.eq.s32.totalorder %s171_s8, 0 }
   0xe   : > { %p1445_p8 = por %p191_p5, %p190_p3  ;;  %p198_p9 = scmp.lt.s32.totalorder %s1349_s26, 3 }
   0xf   : > { %s1451_s10 = scalar_select %p172_p7, %s1337_s23, %s174_s30  }
  0x10   : > { %p1453_p10 = pnand %p947_p6, %p198_p9  ;;  %p1457_p11 = scmp.eq.s32.totalorder %s945_s27, 0 }
  0x11   : > { %s1351_s13 = smov [#allocation6]   ;;  %s1352_s16 = smov [#allocation3]  }
  0x12   : > { %p1053_p12 = pneg %p1453_p10  ;;  %s223_s14 = sshll.u32 %s1351_s13, 4  ;;  %s224_s14 = int_to_ptr.vmem [resolvable:$true] %s223_s14 }
  0x13   : > { %s210_s17 = sshll.u32 %s1352_s16, 4  ;;  %s1168_s18 = scalar_lea.vmem %s224_s14, 256  ;;  %s211_s17 = int_to_ptr.vmem [resolvable:$true] %s210_s17 }
  0x14   : > { %p1465_p13 = pnand %p1457_p11, %p1053_p12  ;;  %p1169_p1 = scmp.ne.s32.totalorder %s224_s14, %s1168_s18 }
  0x15   : > { %p1176_p5 = scmp.lt.s32.totalorder %s224_s14, %s224_s14  ;;  %p1177_p6 = scmp.lt.s32.totalorder %s1168_s18, %s1168_s18 }
  0x16   : > { %p1159_p0 = pneg %p1465_p13 }
  0x17   : > { %p1178_p7 = por %p1177_p6, %p1176_p5 }
  0x18   : > { %p1171_p2 = pnand %p1169_p1, %p1159_p0 }
  0x1a   : > { %p1172_p3 = pneg %p1171_p2 }
  0x1c   : > { %p1179_p9 = pnand %p1178_p7, %p1172_p3 }
  0x1e   : > { %1182 = shalt.err (!%p1179_p9)
}
  0x1f   : > { %s1353_s19 = smov 128   ;;  %s1354_s20 = smov 8  }
  0x20   : > { %1059 = dma.hbm_to_vmem [thread:$0]  (!%p1465_p13), %s1620_s2, 256, %s224_s14, [#allocation7], %s1353_s19, %s1353_s19, %s1354_s20  }
  0x21   : > { %s1194_s30 = scalar_lea.vmem %s211_s17, 256  ;;  %p1202_p3 = scmp.lt.s32.totalorder %s211_s17, %s211_s17 }
  0x22   : > { %p1195_p12 = scmp.ne.s32.totalorder %s211_s17, %s1194_s30  ;;  %p1203_p5 = scmp.lt.s32.totalorder %s1194_s30, %s1194_s30 }
  0x24   : > { %p1197_p1 = pnand %p1195_p12, %p1159_p0  ;;  %p1204_p6 = por %p1203_p5, %p1202_p3 }
  0x26   : > { %p1198_p2 = pneg %p1197_p1 }
  0x28   : > { %p1205_p7 = pnand %p1204_p6, %p1198_p2 }
  0x2a   : > { %1208 = shalt.err (!%p1205_p7)
}
  0x2b   : > { %1056 = dma.hbm_to_vmem [thread:$0]  (!%p1465_p13), %s1619_s1, 256, %s211_s17, [#allocation4], %s1353_s19, %s1353_s19, %s1354_s20  }
  0x2c   : > { %s1355_s14 = smov [#allocation8]   ;;  %s1356_s18 = smov [#allocation9]  }
  0x2d   : > { %s236_s16 = sshll.u32 %s1355_s14, 4  ;;  %s252_s27 = sshll.u32 %s1356_s18, 4  ;;  %s237_s16 = int_to_ptr.vmem [resolvable:$true] %s236_s16  ;;  %s253_s27 = int_to_ptr.vmem [resolvable:$true] %s252_s27 }
  0x2e   : > { %s1220_s28 = scalar_lea.vmem %s237_s16, 256  ;;  %p1228_p2 = scmp.lt.s32.totalorder %s237_s16, %s237_s16 }
  0x2f   : > { %p1221_p9 = scmp.ne.s32.totalorder %s237_s16, %s1220_s28  ;;  %p1229_p3 = scmp.lt.s32.totalorder %s1220_s28, %s1220_s28 }
  0x31   : > { %p1223_p12 = pnand %p1221_p9, %p1159_p0  ;;  %p1230_p5 = por %p1229_p3, %p1228_p2 }
  0x33   : > { %p1224_p1 = pneg %p1223_p12 }
  0x35   : > { %p1231_p6 = pnand %p1230_p5, %p1224_p1 }
  0x37   : > { %1234 = shalt.err (!%p1231_p6)
}
  0x38   : > { %1062 = dma.hbm_to_vmem [thread:$0]  (!%p1465_p13), %s1621_s3, 256, %s237_s16, [#allocation7], %s1353_s19, %s1353_s19, %s1354_s20  }
  0x39   : > { %s1246_s8 = scalar_lea.vmem %s253_s27, 256  ;;  %p1254_p2 = scmp.lt.s32.totalorder %s253_s27, %s253_s27 }
  0x3a   : > { %p1247_p7 = scmp.ne.s32.totalorder %s253_s27, %s1246_s8  ;;  %p1255_p1 = scmp.lt.s32.totalorder %s1246_s8, %s1246_s8 }
  0x3c   : > { %p1249_p9 = pnand %p1247_p7, %p1159_p0  ;;  %p1256_p3 = por %p1255_p1, %p1254_p2 }
  0x3e   : > { %p1250_p12 = pneg %p1249_p9 }
  0x40   : > { %p1257_p5 = pnand %p1256_p3, %p1250_p12 }
  0x42   : > { %1260 = shalt.err (!%p1257_p5)
}
  0x43   : > { %1065 = dma.hbm_to_vmem [thread:$0]  (!%p1465_p13), %s1623_s5, 256, %s253_s27, [#allocation10], %s1353_s19, %s1353_s19, %s1354_s20  }
  0x44   : > { %279 = sbr.rel (%p1453_p10) target bundleno = 1511 (0x5e7), region = 44 }
  0x49   : > { %1312 = dma.done.wait (%p1457_p11), [#allocation4], 256  }
  0x4a   : > { %1314 = vsyncadd (%p1457_p11), [#allocation4], 4294967040 }
  0x4b   : > { %1316 = dma.done.wait (%p1457_p11), [#allocation7], 512  }
  0x4c   : > { %1318 = vsyncadd (%p1457_p11), [#allocation7], 4294966784 }
  0x4d   : > { %1320 = dma.done.wait (%p1457_p11), [#allocation10], 256  }
  0x4e   : > { %1322 = vsyncadd (%p1457_p11), [#allocation10], 4294967040  ;;  %vm337_vm0 = vcmask 130048   ;;  %p324_p10 = scmp.lt.s32.totalorder %s1341_s24, 1  ;;  %v1357_v0 = vmov 0.0   ;;  %vm1358_vm1 = vmmov 0  }
  0x4f   : > { %338 = vst.msk [vmem:[#allocation2] sm:$0xff] %vm337_vm0, %v1357_v0  ;;  %339 = vst.msk [vmem:[#allocation2 + $0x8] sm:$0xff] %vm337_vm0, %v1357_v0  ;;  %1001 = vmatprep.subr.bf16.mxu0 %v1357_v0  ;;  %1003 = vmatprep.mubr.msk.bf16.mxu0 %vm1358_vm1, %v1357_v0  ;;  %v401_v2 = vld [vmem:[#allocation3] sm:$0xff]  ;;  %v402_v13 = vld [vmem:[#allocation3 + $0x8] sm:$0xff]  ;;  %v1359_v28 = vmov 0   ;;  %s321_s17 = sand.u32 1, %s1333_s22  }
  0x50   : > { %s325_s11 = scalar_select %p324_p10, %s1341_s24, 1  ;;  %1011 = vmatprep.mubr.msk.f32.mxu1 %vm337_vm0, %v401_v2  ;;  %v403_v14 = vld [vmem:[#allocation6] sm:$0xff]  ;;  %v404_v15 = vld [vmem:[#allocation6 + $0x8] sm:$0xff]  ;;  %1138 = vset.pattern.permute.xlu0 %v1359_v28  ;;  %vm811_vm2 = vcmask 125952  }
  0x51   : > { %1139 = vset.pattern.permute.xlu1 %v1359_v28  ;;  %v583_v37 = vld [vmem:[%s1622_s4] sm:$0xff]  ;;  %v584_v41 = vld [vmem:[%s1622_s4 + $0x8] sm:$0xff]  ;;  %s958_s30 = sshll.u32 %s321_s17, 3  ;;  %s982_s14 = sshll.u32 %s1341_s24, 7 }
  0x52   : > { %s979_s15 = sshll.u32 %s325_s11, 3  ;;  %v610_v51 = vld [vmem:[#allocation9 + $0x8] sm:$0xff]  ;;  %v609_v53 = vld [vmem:[#allocation9] sm:$0xff]  ;;  %s323_s8 = scalar_lea.vmem [#allocation11], %s958_s30 }
  0x53   : > { %s331_s16 = scalar_lea.vmem %s1618_s0, %s979_s15  ;;  %s828_s13 = sshll.u32 %s323_s8, 4  ;;  %s1566_s13 = int_to_ptr.vmem [resolvable:$true] %s828_s13 }
  0x54   : > { %v1140_v1 = vld [vmem:[%s331_s16] sm:$0xff]   ;;  %s1571_s19 = scalar_lea.hbm %s1624_s6, %s982_s14  ;;  %s1573_s20 = scalar_lea.sflag [#allocation5], %s321_s17 }
  0x55   : > { %1002 = vmatpush3.bf16.xpose.msra.mxu0 %v1140_v1  ;;  %s1261_s24 = scalar_lea.vmem %s1566_s13, 128  ;;  %s1360_s16 = smov [#allocation11]  }
  0x56   : > { %v342_v3 = vld [vmem:[#allocation2] sm:$0xff]  ;;  %v343_v7 = vld [vmem:[#allocation2 + $0x8] sm:$0xff]  ;;  %p1262_p11 = scmp.ne.s32.totalorder %s1566_s13, %s1261_s24  ;;  %s1265_s12 = sshll.u32 %s1360_s16, 4  ;;  %s1266_s12 = int_to_ptr.vmem [resolvable:$false] %s1265_s12 }
  0x57   : > { %s1267_s18 = scalar_lea.vmem %s1266_s12, 256  ;;  %p1268_p6 = scmp.lt.s32.totalorder %s1566_s13, %s1266_s12 }
  0x58   : > { %p1263_p13 = pnand %p1262_p11, %p1438_p4  ;;  %p1269_p7 = scmp.lt.s32.totalorder %s1267_s18, %s1261_s24 }
  0x5a   : > { %p1264_p0 = pneg %p1263_p13  ;;  %p1270_p9 = por %p1269_p7, %p1268_p6 }
  0x5c   : > { %1004 = vmatmul.mubr.bf16.vlgmr.msra.gmra.mxu0 %v1140_v1  ;;  %p1271_p12 = pnand %p1270_p9, %p1264_p0 }
 0x11c   : > { %v384_v4 = vpop.f32.mrf.mxu0 }
 0x11d   : > { %v391_v5 = vadd.f32 %v384_v4, %v342_v3 }
 0x11e   : > { %v1005_v6 = vpop.f32.mrf.mxu0 }
 0x11f   : > { %394 = vst.msk [vmem:[#allocation2] sm:$0xff] %vm337_vm0, %v391_v5  ;;  %v721_v5 = vld [vmem:[#allocation8 + $0x8] sm:$0xff]  ;;  %v720_v6 = vld [vmem:[#allocation8] sm:$0xff] }
 0x120   : > { %v387_v8 = vpop.f32.mrf.mxu0 }
 0x121   : > { %v392_v9 = vadd.f32 %v387_v8, %v343_v7 }
 0x122   : > { %v1006_v10 = vpop.f32.mrf.mxu0 }
 0x123   : > { %395 = vst.msk [vmem:[#allocation2 + $0x8] sm:$0xff] %vm337_vm0, %v392_v9 }
 0x126   : > { %v399_v12 = vld [vmem:[#allocation2] sm:$0xff] }
 0x12a   : > { %v400_v11 = vld [vmem:[#allocation2 + $0x8] sm:$0xff] }
 0x12b   : > { %1007 = vmatprep.subr.mxu1 %v400_v11 }
 0x12c   : > { %1008 = vmatpush3.msra.mxu1 %v400_v11 }
 0x12d   : > { %1009 = vmatprep.subr.mxu1 %v399_v12 }
 0x12e   : > { %1010 = vmatpush3.msra.mxu1 %v399_v12 }
 0x12f   : > { %1012 = vmatmul.mubr.msk.f32.vlgmr.msra.gmra.mxu1 %vm337_vm0, %v402_v13  ;;  %1014 = vmatprep.subr.mxu1 %v400_v11 }
 0x130   : > { %1015 = vmatpush3.msra.mxu1 %v400_v11  ;;  %1018 = vmatprep.mubr.msk.f32.mxu1 %vm337_vm0, %v403_v14 }
 0x131   : > { %1016 = vmatprep.subr.mxu1 %v399_v12 }
 0x132   : > { %1017 = vmatpush3.msra.mxu1 %v399_v12 }
 0x133   : > { %1019 = vmatmul.mubr.msk.f32.vlgmr.msra.gmra.mxu1 %vm337_vm0, %v404_v15  ;;  %1028 = vmatprep.subr.mxu1 %v721_v5 }
 0x134   : > { %1029 = vmatpush3.msra.mxu1 %v721_v5 }
 0x135   : > { %1030 = vmatprep.subr.mxu1 %v720_v6 }
 0x136   : > { %1031 = vmatpush3.msra.mxu1 %v720_v6 }
 0x1ef   : > { %v1013_v16 = vpop.f32.mrf.mxu1 }
 0x1f0   : > { %v568_v20 = vmul.f32 %v1013_v16, %v402_v13 }
 0x1f1   : > { %v477_v17 = vpop.f32.mrf.mxu1 }
 0x1f2   : > { %v567_v18 = vmul.f32 %v477_v17, %v401_v2  ;;  %v572_v26 = vsel %vm337_vm0, %v568_v20, 0.0 }
 0x1f3   : > { %v1020_v19 = vpop.f32.mrf.mxu1 }
 0x1f4   : > { %v569_v21 = vsel %vm337_vm0, %v567_v18, 0.0  ;;  %v576_v22 = vmul.f32 %v1020_v19, %v404_v15 }
 0x1f5   : > { %570 = vadd.xlane.f32.xlu0 %v569_v21  ;;  %v558_v23 = vpop.f32.mrf.mxu1 }
 0x1f6   : > { %v580_v24 = vsel %vm337_vm0, %v576_v22, 0.0  ;;  %v575_v25 = vmul.f32 %v558_v23, %v403_v14 }
 0x1f7   : > { %581 = vadd.xlane.f32.xlu1 %v580_v24 }
 0x1f8   : > { %v577_v27 = vsel %vm337_vm0, %v575_v25, 0.0 }
 0x1f9   : > { %573 = vadd.xlane.f32.xlu0 %v572_v26 }
 0x1fb   : > { %578 = vadd.xlane.f32.xlu1 %v577_v27 }
 0x27e   : > { %v571_v29 = vpop.xlane.xlu0 %570 }
 0x27f   : > { %v585_v30 = vmax.f32 %v571_v29, 1e-24 }
 0x280   : > { %v582_v31 = vpop.xlane.xlu1 %581 }
 0x281   : > { %1141 = vrsqrt.f32 %v585_v30  ;;  %v592_v32 = vmax.f32 %v582_v31, 1e-24 }
 0x282   : > { %v574_v33 = vpop.xlane.xlu0 %573 }
 0x283   : > { %v586_v34 = vmax.f32 %v574_v33, 1e-24  ;;  %1143 = vrsqrt.f32 %v592_v32 }
 0x284   : > { %v579_v35 = vpop.xlane.xlu1 %578 }
 0x285   : > { %1145 = vrsqrt.f32 %v586_v34  ;;  %v591_v36 = vmax.f32 %v579_v35, 1e-24 }
 0x287   : > { %1147 = vrsqrt.f32 %v591_v36 }
 0x28e   : > { %v1142_v38 = vpop.eup %1141 }
 0x28f   : > { %v589_v39 = vmul.f32 %v1142_v38, %v583_v37 }
 0x290   : > { %v1144_v40 = vpop.eup %1143 }
 0x291   : > { %597 = vperm.xlu0 %1138, %v589_v39   ;;  %v608_v42 = vmul.f32 %v1144_v40, %v404_v15 }
 0x292   : > { %v1146_v43 = vpop.eup %1145 }
 0x293   : > { %v590_v44 = vmul.f32 %v1146_v43, %v584_v41  ;;  %1021 = vmatprep.subr.msk.mxu0 %vm337_vm0, %v608_v42 }
 0x294   : > { %v1148_v45 = vpop.eup %1147  ;;  %1022 = vmatpush3.xpose.msk.msra.mxu0 %vm337_vm0, %v608_v42 }
 0x295   : > { %602 = vperm.xlu1 %1139, %v590_v44   ;;  %v607_v46 = vmul.f32 %v1148_v45, %v403_v14 }
 0x297   : > { %1023 = vmatprep.subr.msk.mxu0 %vm337_vm0, %v607_v46 }
 0x298   : > { %1024 = vmatpush3.xpose.msk.msra.mxu0 %vm337_vm0, %v607_v46 }
 0x30c   : > { %v598_v47 = vpop.permute.xlu0 %597 }
 0x30d   : > { %v605_v48 = vmul.f32 %v598_v47, %v477_v17 }
 0x30f   : > { %1025 = vmatprep.mubr.msk.f32.mxu0 %vm337_vm0, %v605_v48 }
 0x310   : > { %v603_v49 = vpop.permute.xlu1 %602 }
 0x311   : > { %v606_v50 = vmul.f32 %v1013_v16, %v603_v49 }
 0x313   : > { %1026 = vmatmul.mubr.msk.f32.vlgmr.msra.gmra.mxu0 %vm337_vm0, %v606_v50 }
 0x3d3   : > { %v1027_v52 = vpop.f32.mrf.mxu0 }
 0x3d4   : > { %v695_v54 = vadd.f32 %v1027_v52, %v610_v51 }
 0x3d5   : > { %v689_v55 = vpop.f32.mrf.mxu0 }
 0x3d6   : > { %v690_v56 = vadd.f32 %v689_v55, %v609_v53  ;;  %v701_v57 = vsel %vm337_vm0, %v695_v54, -inf }
 0x3d7   : > { %702 = vmax.xlane.f32.xlu0 %v701_v57 }
 0x3d8   : > { %v698_v58 = vsel %vm337_vm0, %v690_v56, -inf }
 0x3d9   : > { %699 = vmax.xlane.f32.xlu1 %v698_v58 }
 0x460   : > { %v703_v59 = vpop.xlane.xlu0 %702 }
 0x461   : > { %v705_v60 = vsub.f32 %v695_v54, %v703_v59 }
 0x462   : > { %v700_v61 = vpop.xlane.xlu1 %699 }
 0x463   : > { %v704_v62 = vsub.f32 %v690_v56, %v700_v61  ;;  %v708_v63 = vmul.f32 1.442695, %v705_v60 }
 0x465   : > { %v706_v0 = vmul.f32 1.442695, %v704_v62 }
 0x467   : > { %1149 = vpow2.f32 %v706_v0 }
 0x468   : > { %1151 = vpow2.f32 %v708_v63 }
 0x474   : > { %v1150_v1 = vpop.eup %1149 }
 0x475   : > { %v710_v2 = vsel %vm337_vm0, %v1150_v1, 0.0  ;;  %v1152_v3 = vpop.eup %1151 }
 0x476   : > { %711 = vadd.xlane.f32.xlu1 %v710_v2  ;;  %v713_v4 = vsel %vm337_vm0, %v1152_v3, 0.0 }
 0x47a   : > { %714 = vadd.xlane.f32.xlu1 %v713_v4 }
 0x4ff   : > { %v712_v7 = vpop.xlane.xlu1 %711 }
 0x500   : > { %1153 = vrcp.f32 %v712_v7 }
 0x503   : > { %v715_v8 = vpop.xlane.xlu1 %714 }
 0x504   : > { %1155 = vrcp.f32 %v715_v8 }
 0x50d   : > { %v1154_v9 = vpop.eup %1153 }
 0x50e   : > { %v717_v10 = vmul.f32 %v1154_v9, %v1150_v1 }
 0x510   : > { %1032 = vmatprep.mubr.msk.f32.mxu1 %vm337_vm0, %v717_v10 }
 0x511   : > { %v1156_v11 = vpop.eup %1155 }
 0x512   : > { %v719_v12 = vmul.f32 %v1156_v11, %v1152_v3 }
 0x514   : > { %1033 = vmatmul.mubr.msk.f32.vlgmr.msra.gmra.mxu1 %vm337_vm0, %v719_v12 }
 0x5d4   : > { %v1034_v13 = vpop.f32.mrf.mxu1 }
 0x5d5   : > { %v981_v14 = vpack.c.bf16 %v1034_v13, %v1034_v13 }
 0x5d6   : > { %v794_v15 = vpop.f32.mrf.mxu1 }
 0x5d7   : > { %813 = vst.msk [vmem:[%s323_s8 + $0x4] sm:$0xf] %vm811_vm2, %v981_v14  ;;  %v980_v16 = vpack.c.bf16 %v794_v15, %v794_v15 }
 0x5d9   : > { %812 = vst.msk [vmem:[%s323_s8] sm:$0xf] %vm811_vm2, %v980_v16 }
 0x5da   : > { %1274 = shalt.err (!%p1271_p12)
}
 0x5db   : > { %s1275_s27 = scalar_lea.hbm %s1571_s19, 128  ;;  %s1279_s30 = scalar_lea.hbm %s1624_s6, 256 }
 0x5dc   : > { %p1276_p2 = scmp.ne.s32.totalorder %s1571_s19, %s1275_s27  ;;  %p1280_p5 = scmp.lt.s32.totalorder %s1571_s19, %s1624_s6 }
 0x5dd   : > { %p1281_p10 = scmp.lt.s32.totalorder %s1279_s30, %s1275_s27 }
 0x5de   : > { %p1277_p1 = pnand %p1276_p2, %p1438_p4 }
 0x5df   : > { %p1282_p11 = por %p1281_p10, %p1280_p5 }
 0x5e0   : > { %p1278_p3 = pneg %p1277_p1 }
 0x5e2   : > { %p1283_p13 = pnand %p1282_p11, %p1278_p3 }
 0x5e4   : > { %1286 = shalt.err (!%p1283_p13)
}
 0x5e5   : > { %s1361_s11 = smov 64   ;;  %s1362_s15 = smov 4  }
 0x5e6   : > { %1051 = dma.vmem_to_hbm [thread:$0]  (%p1438_p4), %s1566_s13, 128, %s1571_s19, %s1573_s20, %s1361_s11, %s1361_s11, %s1362_s15  }
 0x5e7 PF: > { %p1078_p0 = scmp.ge.s32.totalorder %s1349_s26, 2  ;;  %s843_s24 = sand.u32 1, %s1329_s21  }
 0x5e8   : > { %s844_s16 = scalar_lea.sflag [#allocation5], %s843_s24 }
 0x5e9   : > { %p1067_p6 = pnand %p1078_p0, %p1445_p8 }
 0x5eb   : > { %p1068_p7 = pneg %p1067_p6 }
 0x5ed   : > { %1324 = dma.done.wait (%p1068_p7), %s844_s16, 128  }
 0x5ee   : > { %1326 = vsyncadd (%p1068_p7), %s844_s16, 4294967168  ;;  %s22_s26 = sadd.s32 1, %s1349_s26   ;;  %s1630_s21 = smov %s1333_s22 }
 0x5ef   : > { %p19_p9 = scmp.ge.s32.totalorder %s22_s26, 4   ;;  %s1631_s22 = smov %s1337_s23 }
 0x5f0   : > { %s1632_s23 = smov %s1451_s10  ;;  %s1633_s24 = smov %s1345_s25 }
 0x5f1   : > { %s1634_s25 = smov %s1636_s29  ;;  %21 = sbr.rel (!%p19_p9) target bundleno = 7 (0x7), region = 104 }
 0x5f6   :  { %849 = vsyncpa [#allocation4], 1 }
 0x5f7   :  { %851 = vsyncpa [#allocation4 + $0x1], 1 }
 0x5f8   :  { %852 = vsyncpa [#allocation7], 1 }
 0x5f9   :  { %853 = vsyncpa [#allocation10], 1 }
 0x5fa   :  { %854 = vsyncpa [#allocation5], 1 }
 0x5fb   :  { %856 = vsyncpa [#allocation5 + $0x1], 1 }

</bundles_post_ra>
